<compile_context>
chip_gen: v6e
topology: v6e:2x2x1
jax: 0.10.0
libtpu: 0.0.40
codegen_flags: <defaults>
</compile_context>

<pallas_src>
import jax
import jax.numpy as jnp
import numpy as np
from jax.experimental import pallas as pl
from jax.experimental.pallas import tpu as pltpu


def adaptive_similarity_kernel(x_ref, wf_ref, bf_ref, seg_ref,
                               w1_ref, b1_ref, w2_ref, b2_ref,
                               w3_ref, b3_ref, out_ref):
    tb = x_ref.shape[0]              # batch tile (multiple of 8)
    Dd = wf_ref.shape[1] // 6        # H*d*d lanes per expanded q/k/v block

    # One fused MXU matmul: expanded q/k/v for BOTH attention directions.
    # Lane blocks of `big`: [q1 | q2 | k2 | k1 | v2 | v1], each Dd wide.
    big = jnp.dot(x_ref[...], wf_ref[...],
                  preferred_element_type=jnp.float32) + bf_ref[...]   # [tb, 6*Dd]
    q = big[:, : 2 * Dd]             # [q1e | q2e]   (1/sqrt(d) pre-folded)
    k = big[:, 2 * Dd: 4 * Dd]       # [k2e | k1e]   (cross pairing pre-folded)
    v = big[:, 4 * Dd:]              # [v2e | v1e]

    # All attention scores, lane-dense.  The per-row max is uniform inside every
    # softmax group -> softmax-invariant, and keeps every exponent <= 0.
    s = q * k                                                         # [tb, 2*Dd]
    m = jnp.max(s, axis=-1, keepdims=True)
    p = jnp.exp(s - m)

    # Single segment-sum matmul computes all softmax denominators (rows 0:tb)
    # and all weighted-value numerators (rows tb:2tb) at once.
    stacked = jnp.concatenate([p, p * v], axis=0)                     # [2*tb, 2*Dd]
    res = jnp.dot(stacked, seg_ref[...],
                  preferred_element_type=jnp.float32)                 # [2*tb, 2*D]
    denom = jnp.maximum(res[:tb, :], 1e-30)   # clamp: no NaN if a group underflows
    att = res[tb:, :] * pl.reciprocal(denom, approx=False)            # [tb, 2*D]
    # `att` is already combined_features = [attended_features1 | attended_features2].

    # similarity_net: Linear(2D->D)+ReLU, Linear(D->D/2)+ReLU, Linear(D/2->1).
    h1 = jnp.maximum(
        jnp.dot(att, w1_ref[...], preferred_element_type=jnp.float32) + b1_ref[...], 0.0)
    h2 = jnp.maximum(
        jnp.dot(h1, w2_ref[...], preferred_element_type=jnp.float32) + b2_ref[...], 0.0)
    # Final D/2 -> 1 layer as a VPU dot (elementwise mul + lane reduce).
    out_ref[...] = jnp.sum(h2 * w3_ref[...], axis=-1, keepdims=True) + b3_ref[...]


def build_fused_params(params, num_heads):
    """Built ONCE per set of weights (hoisted out of the per-call path)."""
    D = params["wq"].shape[0]
    d = D // num_heads
    Dd = D * d
    scale = 1.0 / float(np.sqrt(d))

    # Lane index c = h*d*d + i*d + j for the flattened per-direction score tensor.
    c = np.arange(Dd)
    q_cols = (c // (d * d)) * d + (c // d) % d       # h*d + i  (duplicate over j)
    kv_cols = (c // (d * d)) * d + c % d             # h*d + j  (duplicate over i)

    wq_e = (params["wq"] * scale)[:, q_cols]         # fold 1/sqrt(d) into q
    bq_e = (params["bq"] * scale)[:, q_cols]
    wk_e = params["wk"][:, kv_cols]
    bk_e = params["bk"][:, kv_cols]
    wv_e = params["wv"][:, kv_cols]
    bv_e = params["bv"][:, kv_cols]

    z = jnp.zeros_like(wq_e)
    # Kernel input x rows are [f1 | f2] in lanes; weight rows 0:D act on f1,
    # rows D:2D act on f2.  Output lane blocks: [q1 | q2 | k2 | k1 | v2 | v1],
    # so the cross-attention pairing needs NO in-kernel row swap.
    top = jnp.concatenate([wq_e, z, z, wk_e, z, wv_e], axis=1)        # acts on f1
    bot = jnp.concatenate([z, wq_e, wk_e, z, wv_e, z], axis=1)        # acts on f2
    w_fused = jnp.concatenate([top, bot], axis=0)                     # [2D, 6*Dd]
    b_fused = jnp.concatenate([bq_e, bq_e, bk_e, bk_e, bv_e, bv_e], axis=1)

    # 0/1 segment-sum matrix: lane c' (of the 2*Dd score lanes) belongs to
    # softmax group / output lane r = c' // d   (r in [0, 2D)).
    cc = np.arange(2 * Dd)
    seg = jnp.asarray((cc[:, None] // d == np.arange(2 * D)[None, :]).astype(np.float32))

    return {"w_fused": w_fused, "b_fused": b_fused, "seg": seg,
            "w1": params["w1"], "b1": params["b1"],
            "w2": params["w2"], "b2": params["b2"],
            "w3_row": params["w3"].T, "b3": params["b3"]}


@jax.jit
def adaptive_similarity(features1, features2, fused):
    B, D = features1.shape
    x = jnp.concatenate([features1, features2], axis=1)               # [B, 2D]

    # Batch grid: pad to a sublane multiple, tile, weights stay VMEM-resident.
    B8 = ((B + 7) // 8) * 8
    tile_b = min(B8, 512)
    nt = (B8 + tile_b - 1) // tile_b
    b_pad = nt * tile_b
    if b_pad != B:
        x = jnp.pad(x, ((0, b_pad - B), (0, 0)))

    args = (x, fused["w_fused"], fused["b_fused"], fused["seg"],
            fused["w1"], fused["b1"], fused["w2"], fused["b2"],
            fused["w3_row"], fused["b3"])

    resident = lambda a: pl.BlockSpec(a.shape, lambda i: (0, 0))      # grid-invariant
    in_specs = [pl.BlockSpec((tile_b, 2 * D), lambda i: (i, 0))]
    in_specs += [resident(a) for a in args[1:]]

    out = pl.pallas_call(
        adaptive_similarity_kernel,
        out_shape=jax.ShapeDtypeStruct((b_pad, 1), jnp.float32),
        grid=(nt,),
        in_specs=in_specs,
        out_specs=pl.BlockSpec((tile_b, 1), lambda i: (i, 0)),
        compiler_params=pltpu.CompilerParams(
            dimension_semantics=("parallel",)),
    )(*args)
    return out[:B, 0]                                                 # [B]


def reference_forward(features1, features2, params, num_heads):
    """Pure-JAX reference matching the PyTorch forward semantics."""
    B, D = features1.shape
    d = D // num_heads

    def proj(x, w, b):
        return x @ w + b

    q1 = proj(features1, params["wq"], params["bq"]).reshape(B, num_heads, d)
    k1 = proj(features1, params["wk"], params["bk"]).reshape(B, num_heads, d)
    v1 = proj(features1, params["wv"], params["bv"]).reshape(B, num_heads, d)
    q2 = proj(features2, params["wq"], params["bq"]).reshape(B, num_heads, d)
    k2 = proj(features2, params["wk"], params["bk"]).reshape(B, num_heads, d)
    v2 = proj(features2, params["wv"], params["bv"]).reshape(B, num_heads, d)

    s12 = jnp.einsum('bhi,bhj->bhij', q1, k2)
    w12 = jax.nn.softmax(s12 / d ** 0.5, axis=-1)
    att1 = jnp.einsum('bhij,bhj->bhi', w12, v2).reshape(B, D)

    s21 = jnp.einsum('bhi,bhj->bhij', q2, k1)
    w21 = jax.nn.softmax(s21 / d ** 0.5, axis=-1)
    att2 = jnp.einsum('bhij,bhj->bhi', w21, v1).reshape(B, D)

    comb = jnp.concatenate([att1, att2], axis=1)
    h1 = jax.nn.relu(comb @ params["w1"] + params["b1"])
    h2 = jax.nn.relu(h1 @ params["w2"] + params["b2"])
    return (h2 @ params["w3"] + params["b3"])[:, 0]


def init_params(key, feature_dim):
    """Deterministic synthetic parameters (not a checkpoint load).

    Weights stored transposed vs. torch.nn.Linear: shape [in_features, out_features].
    Biases stored as [1, out_features] so they broadcast cleanly in-kernel.
    """
    D = feature_dim
    keys = jax.random.split(key, 10)

    def w(k, fan_in, fan_out):
        return jax.random.normal(k, (fan_in, fan_out), jnp.float32) * 0.1

    def b(k, fan_out):
        return jax.random.normal(k, (1, fan_out), jnp.float32) * 0.01

    return {
        "wq": w(keys[0], D, D), "bq": b(keys[1], D),
        "wk": w(keys[2], D, D), "bk": b(keys[3], D),
        "wv": w(keys[4], D, D), "bv": b(keys[5], D),
        # NOTE: output_projection exists in __init__ but is unused in forward -> omitted.
        "w1": w(keys[6], 2 * D, D), "b1": b(keys[7], D),
        "w2": w(keys[8], D, D // 2), "b2": b(keys[9], D // 2),
        "w3": jnp.full((D // 2, 1), 0.07, jnp.float32),
        "b3": jnp.full((1, 1), 0.01, jnp.float32),
    }


if __name__ == "__main__":
    batch = 8
    feature_dim = 32
    num_heads = 8

    key = jax.random.PRNGKey(0)
    k_f1, k_f2, k_params = jax.random.split(key, 3)
    features1 = jax.random.normal(k_f1, (batch, feature_dim), jnp.float32)
    features2 = jax.random.normal(k_f2, (batch, feature_dim), jnp.float32)
    params = init_params(k_params, feature_dim)

    fused = build_fused_params(params, num_heads)    # built once, reused per call
    sim = adaptive_similarity(features1, features2, fused)
    sim = jax.block_until_ready(sim)

    ref = reference_forward(features1, features2, params, num_heads)
    assert sim.shape == (batch,)
    assert jnp.allclose(sim, ref, atol=1e-3, rtol=1e-3), (sim, ref)

    print("KERNEL_OK")
</pallas_src>

<mosaic_0001>
module attributes {stable_mosaic.version = 11 : i64} {
  func.func @adaptive_similarity_kernel(%arg0: i32, %arg1: memref<8x64xf32, #tpu.memory_space<vmem>>, %arg2: memref<64x768xf32, #tpu.memory_space<vmem>>, %arg3: memref<1x768xf32, #tpu.memory_space<vmem>>, %arg4: memref<256x64xf32, #tpu.memory_space<vmem>>, %arg5: memref<64x32xf32, #tpu.memory_space<vmem>>, %arg6: memref<1x32xf32, #tpu.memory_space<vmem>>, %arg7: memref<32x16xf32, #tpu.memory_space<vmem>>, %arg8: memref<1x16xf32, #tpu.memory_space<vmem>>, %arg9: memref<1x16xf32, #tpu.memory_space<vmem>>, %arg10: memref<1x1xf32, #tpu.memory_space<vmem>>, %arg11: memref<8x1xf32, #tpu.memory_space<vmem>>) attributes {dimension_semantics = [#tpu.dimension_semantics<parallel>], iteration_bounds = array<i64: 1>, scalar_prefetch = 0 : i64, scratch_operands = 0 : i64, tpu.core_type = #tpu.core_type<tc>, window_params = [{transform_indices = @transform_0, window_bounds = array<i64: 8, 64>}, {pipeline_mode = #tpu.pipeline_mode<synchronous>, transform_indices = @transform_1, window_bounds = array<i64: 64, 768>}, {pipeline_mode = #tpu.pipeline_mode<synchronous>, transform_indices = @transform_2, window_bounds = array<i64: 1, 768>}, {pipeline_mode = #tpu.pipeline_mode<synchronous>, transform_indices = @transform_3, window_bounds = array<i64: 256, 64>}, {pipeline_mode = #tpu.pipeline_mode<synchronous>, transform_indices = @transform_4, window_bounds = array<i64: 64, 32>}, {pipeline_mode = #tpu.pipeline_mode<synchronous>, transform_indices = @transform_5, window_bounds = array<i64: 1, 32>}, {pipeline_mode = #tpu.pipeline_mode<synchronous>, transform_indices = @transform_6, window_bounds = array<i64: 32, 16>}, {pipeline_mode = #tpu.pipeline_mode<synchronous>, transform_indices = @transform_7, window_bounds = array<i64: 1, 16>}, {pipeline_mode = #tpu.pipeline_mode<synchronous>, transform_indices = @transform_8, window_bounds = array<i64: 1, 16>}, {pipeline_mode = #tpu.pipeline_mode<synchronous>, transform_indices = @transform_9, window_bounds = array<i64: 1, 1>}, {transform_indices = @transform_10, window_bounds = array<i64: 8, 1>}]} {
    %c0 = arith.constant 0 : index
    %c0_0 = arith.constant 0 : index
    %0 = vector.load %arg1[%c0, %c0_0] : memref<8x64xf32, #tpu.memory_space<vmem>>, vector<8x64xf32>
    %c0_1 = arith.constant 0 : index
    %c0_2 = arith.constant 0 : index
    %1 = vector.load %arg2[%c0_1, %c0_2] : memref<64x768xf32, #tpu.memory_space<vmem>>, vector<64x768xf32>
    %cst = arith.constant dense<0.000000e+00> : vector<8x768xf32>
    %2 = tpu.matmul %0, %1, %cst {dimension_numbers = #tpu.dot_dimension_numbers<[1], [0], [0], [1], [0, 0, 1, 1], [], []>} : vector<8x64xf32>, vector<64x768xf32>, vector<8x768xf32> -> vector<8x768xf32>
    %c0_3 = arith.constant 0 : index
    %c0_4 = arith.constant 0 : index
    %3 = vector.load %arg3[%c0_3, %c0_4] : memref<1x768xf32, #tpu.memory_space<vmem>>, vector<1x768xf32>
    %4 = vector.broadcast %3 : vector<1x768xf32> to vector<8x768xf32>
    %5 = arith.addf %2, %4 : vector<8x768xf32>
    %6 = vector.extract_strided_slice %5 {offsets = [0, 0], sizes = [8, 256], strides = [1, 1]} : vector<8x768xf32> to vector<8x256xf32>
    %7 = vector.extract_strided_slice %5 {offsets = [0, 256], sizes = [8, 256], strides = [1, 1]} : vector<8x768xf32> to vector<8x256xf32>
    %8 = vector.extract_strided_slice %5 {offsets = [0, 512], sizes = [8, 256], strides = [1, 1]} : vector<8x768xf32> to vector<8x256xf32>
    %9 = arith.mulf %6, %7 : vector<8x256xf32>
    %cst_5 = arith.constant dense<0xFF800000> : vector<8xf32>
    %10 = vector.multi_reduction <maximumf>, %9, %cst_5 [1] : vector<8x256xf32> to vector<8xf32>
    %11 = vector.shape_cast %10 : vector<8xf32> to vector<8x1xf32>
    %12 = vector.broadcast %11 : vector<8x1xf32> to vector<8x256xf32>
    %13 = arith.subf %9, %12 : vector<8x256xf32>
    %14 = math.exp %13 : vector<8x256xf32>
    %15 = arith.mulf %14, %8 : vector<8x256xf32>
    %16 = tpu.concatenate %14, %15 in 0 : vector<8x256xf32>, vector<8x256xf32> -> vector<16x256xf32>
    %c0_6 = arith.constant 0 : index
    %c0_7 = arith.constant 0 : index
    %17 = vector.load %arg4[%c0_6, %c0_7] : memref<256x64xf32, #tpu.memory_space<vmem>>, vector<256x64xf32>
    %cst_8 = arith.constant dense<0.000000e+00> : vector<16x64xf32>
    %18 = tpu.matmul %16, %17, %cst_8 {dimension_numbers = #tpu.dot_dimension_numbers<[1], [0], [0], [1], [0, 0, 1, 1], [], []>} : vector<16x256xf32>, vector<256x64xf32>, vector<16x64xf32> -> vector<16x64xf32>
    %19 = vector.extract_strided_slice %18 {offsets = [0, 0], sizes = [8, 64], strides = [1, 1]} : vector<16x64xf32> to vector<8x64xf32>
    %cst_9 = arith.constant 1.000000e-30 : f32
    %20 = vector.broadcast %cst_9 : f32 to vector<8x64xf32>
    %21 = arith.maximumf %19, %20 : vector<8x64xf32>
    %22 = vector.extract_strided_slice %18 {offsets = [8, 0], sizes = [8, 64], strides = [1, 1]} : vector<16x64xf32> to vector<8x64xf32>
    %23 = tpu.reciprocal %21 : vector<8x64xf32> -> vector<8x64xf32>
    %24 = arith.mulf %22, %23 : vector<8x64xf32>
    %c0_10 = arith.constant 0 : index
    %c0_11 = arith.constant 0 : index
    %25 = vector.load %arg5[%c0_10, %c0_11] : memref<64x32xf32, #tpu.memory_space<vmem>>, vector<64x32xf32>
    %cst_12 = arith.constant dense<0.000000e+00> : vector<8x32xf32>
    %26 = tpu.matmul %24, %25, %cst_12 {dimension_numbers = #tpu.dot_dimension_numbers<[1], [0], [0], [1], [0, 0, 1, 1], [], []>} : vector<8x64xf32>, vector<64x32xf32>, vector<8x32xf32> -> vector<8x32xf32>
    %c0_13 = arith.constant 0 : index
    %c0_14 = arith.constant 0 : index
    %27 = vector.load %arg6[%c0_13, %c0_14] : memref<1x32xf32, #tpu.memory_space<vmem>>, vector<1x32xf32>
    %28 = vector.broadcast %27 : vector<1x32xf32> to vector<8x32xf32>
    %29 = arith.addf %26, %28 : vector<8x32xf32>
    %cst_15 = arith.constant 0.000000e+00 : f32
    %30 = vector.broadcast %cst_15 : f32 to vector<8x32xf32>
    %31 = arith.maximumf %29, %30 : vector<8x32xf32>
    %c0_16 = arith.constant 0 : index
    %c0_17 = arith.constant 0 : index
    %32 = vector.load %arg7[%c0_16, %c0_17] : memref<32x16xf32, #tpu.memory_space<vmem>>, vector<32x16xf32>
    %cst_18 = arith.constant dense<0.000000e+00> : vector<8x16xf32>
    %33 = tpu.matmul %31, %32, %cst_18 {dimension_numbers = #tpu.dot_dimension_numbers<[1], [0], [0], [1], [0, 0, 1, 1], [], []>} : vector<8x32xf32>, vector<32x16xf32>, vector<8x16xf32> -> vector<8x16xf32>
    %c0_19 = arith.constant 0 : index
    %c0_20 = arith.constant 0 : index
    %34 = vector.load %arg8[%c0_19, %c0_20] : memref<1x16xf32, #tpu.memory_space<vmem>>, vector<1x16xf32>
    %35 = vector.broadcast %34 : vector<1x16xf32> to vector<8x16xf32>
    %36 = arith.addf %33, %35 : vector<8x16xf32>
    %cst_21 = arith.constant 0.000000e+00 : f32
    %37 = vector.broadcast %cst_21 : f32 to vector<8x16xf32>
    %38 = arith.maximumf %36, %37 : vector<8x16xf32>
    %c0_22 = arith.constant 0 : index
    %c0_23 = arith.constant 0 : index
    %39 = vector.load %arg9[%c0_22, %c0_23] : memref<1x16xf32, #tpu.memory_space<vmem>>, vector<1x16xf32>
    %40 = vector.broadcast %39 : vector<1x16xf32> to vector<8x16xf32>
    %41 = arith.mulf %38, %40 : vector<8x16xf32>
    %cst_24 = arith.constant dense<0.000000e+00> : vector<8xf32>
    %42 = vector.multi_reduction <add>, %41, %cst_24 [1] : vector<8x16xf32> to vector<8xf32>
    %43 = vector.shape_cast %42 : vector<8xf32> to vector<8x1xf32>
    %c0_25 = arith.constant 0 : index
    %c0_26 = arith.constant 0 : index
    %44 = vector.load %arg10[%c0_25, %c0_26] : memref<1x1xf32, #tpu.memory_space<vmem>>, vector<1x1xf32>
    %45 = vector.broadcast %44 : vector<1x1xf32> to vector<8x1xf32>
    %46 = arith.addf %43, %45 : vector<8x1xf32>
    %c0_27 = arith.constant 0 : index
    %c0_28 = arith.constant 0 : index
    %47 = vector.load %arg11[%c0_27, %c0_28] : memref<8x1xf32, #tpu.memory_space<vmem>>, vector<8x1xf32>
    tpu.vector_store %arg11[%c0_27, %c0_28], %46 {strides = array<i32>} : memref<8x1xf32, #tpu.memory_space<vmem>>, vector<8x1xf32>,
    return
  }
  func.func @transform_0(%arg0: i32) -> (i32, i32) {
    %c0_i32 = arith.constant 0 : i32
    %c0_i32_0 = arith.constant 0 : i32
    return %arg0, %c0_i32 : i32, i32
  }
  func.func @transform_1(%arg0: i32) -> (i32, i32) {
    %c0_i32 = arith.constant 0 : i32
    %c0_i32_0 = arith.constant 0 : i32
    %c0_i32_1 = arith.constant 0 : i32
    return %c0_i32, %c0_i32_0 : i32, i32
  }
  func.func @transform_2(%arg0: i32) -> (i32, i32) {
    %c0_i32 = arith.constant 0 : i32
    %c0_i32_0 = arith.constant 0 : i32
    %c0_i32_1 = arith.constant 0 : i32
    return %c0_i32, %c0_i32_0 : i32, i32
  }
  func.func @transform_3(%arg0: i32) -> (i32, i32) {
    %c0_i32 = arith.constant 0 : i32
    %c0_i32_0 = arith.constant 0 : i32
    %c0_i32_1 = arith.constant 0 : i32
    return %c0_i32, %c0_i32_0 : i32, i32
  }
  func.func @transform_4(%arg0: i32) -> (i32, i32) {
    %c0_i32 = arith.constant 0 : i32
    %c0_i32_0 = arith.constant 0 : i32
    %c0_i32_1 = arith.constant 0 : i32
    return %c0_i32, %c0_i32_0 : i32, i32
  }
  func.func @transform_5(%arg0: i32) -> (i32, i32) {
    %c0_i32 = arith.constant 0 : i32
    %c0_i32_0 = arith.constant 0 : i32
    %c0_i32_1 = arith.constant 0 : i32
    return %c0_i32, %c0_i32_0 : i32, i32
  }
  func.func @transform_6(%arg0: i32) -> (i32, i32) {
    %c0_i32 = arith.constant 0 : i32
    %c0_i32_0 = arith.constant 0 : i32
    %c0_i32_1 = arith.constant 0 : i32
    return %c0_i32, %c0_i32_0 : i32, i32
  }
  func.func @transform_7(%arg0: i32) -> (i32, i32) {
    %c0_i32 = arith.constant 0 : i32
    %c0_i32_0 = arith.constant 0 : i32
    %c0_i32_1 = arith.constant 0 : i32
    return %c0_i32, %c0_i32_0 : i32, i32
  }
  func.func @transform_8(%arg0: i32) -> (i32, i32) {
    %c0_i32 = arith.constant 0 : i32
    %c0_i32_0 = arith.constant 0 : i32
    %c0_i32_1 = arith.constant 0 : i32
    return %c0_i32, %c0_i32_0 : i32, i32
  }
  func.func @transform_9(%arg0: i32) -> (i32, i32) {
    %c0_i32 = arith.constant 0 : i32
    %c0_i32_0 = arith.constant 0 : i32
    %c0_i32_1 = arith.constant 0 : i32
    return %c0_i32, %c0_i32_0 : i32, i32
  }
  func.func @transform_10(%arg0: i32) -> (i32, i32) {
    %c0_i32 = arith.constant 0 : i32
    %c0_i32_0 = arith.constant 0 : i32
    return %arg0, %c0_i32 : i32, i32
  }
}

</mosaic_0001>

<bundles_post_ra>
// kernel: adaptive_similarity.1
= control target key start
LH: loop header
LB: loop body
LE: loop exit
PB: predicated region body
PF: predicated region fallthrough
CT: control target
= control target key end

     0   :  { %v758_v3 = vmov 0.0   ;;  %vm118_vm0 = vcmask 523264   ;;  %v88_v63 = vlaneseq  ;;  %vm759_vm1 = vmmov 0   ;;  %s1151_s1 = inlined_call_operand.vmem [shape: f32[64,768], index: 1, kind: input, shape index: {}]   ;;  %s1152_s0 = inlined_call_operand.vmem [shape: f32[8,64], index: 0, kind: input, shape index: {}]   ;;  %s1153_s3 = inlined_call_operand.vmem [shape: f32[256,64], index: 3, kind: input, shape index: {}]   ;;  %s1154_s2 = inlined_call_operand.vmem [shape: f32[1,768], index: 2, kind: input, shape index: {}]   ;;  %s1155_s4 = inlined_call_operand.vmem [shape: f32[64,32], index: 4, kind: input, shape index: {}]   ;;  %s1156_s6 = inlined_call_operand.vmem [shape: f32[32,16], index: 6, kind: input, shape index: {}]   ;;  %s1157_s5 = inlined_call_operand.vmem [shape: f32[1,32], index: 5, kind: input, shape index: {}]   ;;  %s1158_s9 = inlined_call_operand.<no memory space> [shape: f32[1,1], index: 9, kind: input, shape index: {}]   ;;  %s1159_s7 = inlined_call_operand.vmem [shape: f32[1,16], index: 7, kind: input, shape index: {}]   ;;  %s1160_s8 = inlined_call_operand.vmem [shape: f32[1,16], index: 8, kind: input, shape index: {}]   ;;  %s1161_s10 = inlined_call_operand.vmem [shape: f32[8,1], index: 10, kind: output, shape index: {}]  }
   0x1   :  { %v81_v0 = vld [vmem:[%s1151_s1 + $0x158] sm:$0xff]  ;;  %v83_v1 = vld [vmem:[%s1151_s1 + $0x168] sm:$0xff]  ;;  %v80_v2 = vld [vmem:[%s1151_s1 + $0x150] sm:$0xff]  ;;  %186 = vmatprep.mubr.f32.mxu0 %v758_v3  ;;  %257 = vmatprep.mubr.f32.mxu1 %v758_v3  ;;  %vm558_vm2 = vcmask 261120   ;;  %vm641_vm3 = vcmask 130048   ;;  %vm653_vm4 = vcmask 7168  }
   0x2   :  { %138 = vmatprep.subr.mxu0 %v81_v0  ;;  %209 = vmatprep.subr.mxu1 %v83_v1  ;;  %v82_v4 = vld [vmem:[%s1151_s1 + $0x160] sm:$0xff]  ;;  %v75_v5 = vld [vmem:[%s1151_s1 + $0x128] sm:$0xff]  ;;  %v77_v6 = vld [vmem:[%s1151_s1 + $0x138] sm:$0xff]  ;;  %v1008_v0 = vshrl.u32 %v88_v63, 7 }
   0x3   :  { %139 = vmatpush1.msra.mxu0 %v80_v2  ;;  %210 = vmatpush1.msra.mxu1 %v82_v4  ;;  %v74_v7 = vld [vmem:[%s1151_s1 + $0x120] sm:$0xff]  ;;  %v76_v8 = vld [vmem:[%s1151_s1 + $0x130] sm:$0xff]  ;;  %v69_v9 = vld [vmem:[%s1151_s1 + $0xf8] sm:$0xff] }
   0x4   :  { %140 = vmatprep.subr.mxu0 %v75_v5  ;;  %211 = vmatprep.subr.mxu1 %v77_v6  ;;  %v71_v10 = vld [vmem:[%s1151_s1 + $0x108] sm:$0xff]  ;;  %v68_v11 = vld [vmem:[%s1151_s1 + $0xf0] sm:$0xff]  ;;  %v70_v12 = vld [vmem:[%s1151_s1 + $0x100] sm:$0xff]  ;;  %v90_v1 = vsub.s32 0, %v1008_v0  ;;  %v98_v2 = vsub.s32 2, %v1008_v0  ;;  %v94_v5 = vsub.s32 1, %v1008_v0 }
   0x5   :  { %141 = vmatpush1.msra.mxu0 %v74_v7  ;;  %212 = vmatpush1.msra.mxu1 %v76_v8  ;;  %v63_v13 = vld [vmem:[%s1151_s1 + $0xc8] sm:$0xff]  ;;  %v65_v14 = vld [vmem:[%s1151_s1 + $0xd8] sm:$0xff]  ;;  %v62_v15 = vld [vmem:[%s1151_s1 + $0xc0] sm:$0xff]  ;;  %v102_v6 = vsub.s32 3, %v1008_v0 }
   0x6   :  { %142 = vmatprep.subr.mxu0 %v69_v9  ;;  %213 = vmatprep.subr.mxu1 %v71_v10  ;;  %v64_v16 = vld [vmem:[%s1151_s1 + $0xd0] sm:$0xff]  ;;  %v57_v17 = vld [vmem:[%s1151_s1 + $0x98] sm:$0xff]  ;;  %v59_v18 = vld [vmem:[%s1151_s1 + $0xa8] sm:$0xff] }
   0x7   :  { %143 = vmatpush1.msra.mxu0 %v68_v11  ;;  %214 = vmatpush1.msra.mxu1 %v70_v12  ;;  %v56_v19 = vld [vmem:[%s1151_s1 + $0x90] sm:$0xff]  ;;  %v58_v20 = vld [vmem:[%s1151_s1 + $0xa0] sm:$0xff]  ;;  %v51_v21 = vld [vmem:[%s1151_s1 + $0x68] sm:$0xff] }
   0x8   :  { %144 = vmatprep.subr.mxu0 %v63_v13  ;;  %215 = vmatprep.subr.mxu1 %v65_v14  ;;  %v53_v22 = vld [vmem:[%s1151_s1 + $0x78] sm:$0xff]  ;;  %v50_v23 = vld [vmem:[%s1151_s1 + $0x60] sm:$0xff]  ;;  %v52_v24 = vld [vmem:[%s1151_s1 + $0x70] sm:$0xff] }
   0x9   :  { %145 = vmatpush1.msra.mxu0 %v62_v15  ;;  %216 = vmatpush1.msra.mxu1 %v64_v16  ;;  %v45_v25 = vld [vmem:[%s1151_s1 + $0x38] sm:$0xff]  ;;  %v47_v26 = vld [vmem:[%s1151_s1 + $0x48] sm:$0xff]  ;;  %v44_v27 = vld [vmem:[%s1151_s1 + $0x30] sm:$0xff] }
   0xa   :  { %146 = vmatprep.subr.mxu0 %v57_v17  ;;  %217 = vmatprep.subr.mxu1 %v59_v18  ;;  %v46_v28 = vld [vmem:[%s1151_s1 + $0x40] sm:$0xff]  ;;  %v39_v29 = vld [vmem:[%s1151_s1 + $0x8] sm:$0xff]  ;;  %v41_v30 = vld [vmem:[%s1151_s1 + $0x18] sm:$0xff] }
   0xb   :  { %147 = vmatpush1.msra.mxu0 %v56_v19  ;;  %218 = vmatpush1.msra.mxu1 %v58_v20  ;;  %v38_v31 = vld [vmem:[%s1151_s1] sm:$0xff]  ;;  %v40_v32 = vld [vmem:[%s1151_s1 + $0x10] sm:$0xff]  ;;  %v85_v34 = vld [vmem:[%s1151_s1 + $0x178] sm:$0xff] }
   0xc   :  { %148 = vmatprep.subr.mxu0 %v51_v21  ;;  %219 = vmatprep.subr.mxu1 %v53_v22  ;;  %v37_v33 = vld [vmem:[%s1152_s0] sm:$0xff]  ;;  %v84_v35 = vld [vmem:[%s1151_s1 + $0x170] sm:$0xff]  ;;  %v79_v36 = vld [vmem:[%s1151_s1 + $0x148] sm:$0xff] }
   0xd   :  { %149 = vmatpush1.msra.mxu0 %v50_v23  ;;  %220 = vmatpush1.msra.mxu1 %v52_v24  ;;  %v78_v37 = vld [vmem:[%s1151_s1 + $0x140] sm:$0xff]  ;;  %v73_v38 = vld [vmem:[%s1151_s1 + $0x118] sm:$0xff]  ;;  %v72_v39 = vld [vmem:[%s1151_s1 + $0x110] sm:$0xff] }
   0xe   :  { %150 = vmatprep.subr.mxu0 %v45_v25  ;;  %221 = vmatprep.subr.mxu1 %v47_v26  ;;  %v67_v40 = vld [vmem:[%s1151_s1 + $0xe8] sm:$0xff]  ;;  %v66_v41 = vld [vmem:[%s1151_s1 + $0xe0] sm:$0xff]  ;;  %v61_v42 = vld [vmem:[%s1151_s1 + $0xb8] sm:$0xff] }
   0xf   :  { %151 = vmatpush1.msra.mxu0 %v44_v27  ;;  %222 = vmatpush1.msra.mxu1 %v46_v28  ;;  %v60_v43 = vld [vmem:[%s1151_s1 + $0xb0] sm:$0xff]  ;;  %v55_v44 = vld [vmem:[%s1151_s1 + $0x88] sm:$0xff]  ;;  %v54_v45 = vld [vmem:[%s1151_s1 + $0x80] sm:$0xff] }
  0x10   :  { %152 = vmatprep.subr.mxu0 %v39_v29  ;;  %223 = vmatprep.subr.mxu1 %v41_v30  ;;  %v49_v46 = vld [vmem:[%s1151_s1 + $0x58] sm:$0xff]  ;;  %v48_v47 = vld [vmem:[%s1151_s1 + $0x50] sm:$0xff]  ;;  %v43_v48 = vld [vmem:[%s1151_s1 + $0x28] sm:$0xff] }
  0x11   :  { %153 = vmatpush1.msra.mxu0 %v38_v31  ;;  %224 = vmatpush1.msra.mxu1 %v40_v32  ;;  %v42_v49 = vld [vmem:[%s1151_s1 + $0x20] sm:$0xff]  ;;  %v379_v50 = vld [vmem:[%s1153_s3 + $0xf8] sm:$0xff]  ;;  %v378_v52 = vld [vmem:[%s1153_s3 + $0xf0] sm:$0xff] }
  0x12   :  { %659 = vmatmul.mubr.msk.f32.vlgmr.msra.gmra.mxu0 %vm118_vm0, %v37_v33  ;;  %660 = vmatmul.mubr.msk.f32.vlgmr.msra.gmra.mxu1 %vm118_vm0, %v37_v33  ;;  %v363_v51 = vld [vmem:[%s1153_s3 + $0x78] sm:$0xff]  ;;  %v362_v53 = vld [vmem:[%s1153_s3 + $0x70] sm:$0xff]  ;;  %v377_v54 = vld [vmem:[%s1153_s3 + $0xe8] sm:$0xff] }
  0x13   :  { %280 = vmatprep.subr.mxu0 %v85_v34  ;;  %328 = vmatprep.mubr.f32.mxu0 %v758_v3  ;;  %v361_v55 = vld [vmem:[%s1153_s3 + $0x68] sm:$0xff]  ;;  %v376_v56 = vld [vmem:[%s1153_s3 + $0xe0] sm:$0xff]  ;;  %v375_v58 = vld [vmem:[%s1153_s3 + $0xd8] sm:$0xff] }
  0x14   :  { %281 = vmatpush1.msra.mxu0 %v84_v35  ;;  %668 = vmatprep.subr.mxu1 %v379_v50  ;;  %v360_v57 = vld [vmem:[%s1153_s3 + $0x60] sm:$0xff]  ;;  %v359_v59 = vld [vmem:[%s1153_s3 + $0x58] sm:$0xff]  ;;  %v374_v60 = vld [vmem:[%s1153_s3 + $0xd0] sm:$0xff] }
  0x15   :  { %282 = vmatprep.subr.mxu0 %v79_v36  ;;  %669 = vmatpush3.msra.mxu1 %v363_v51  ;;  %v358_v61 = vld [vmem:[%s1153_s3 + $0x50] sm:$0xff]  ;;  %v373_v62 = vld [vmem:[%s1153_s3 + $0xc8] sm:$0xff]  ;;  %v1015_v4 = vld [vmem:[%s1154_s2] sm:$0x3f] }
  0x16   :  { %283 = vmatpush1.msra.mxu0 %v78_v37  ;;  %670 = vmatprep.subr.mxu1 %v378_v52  ;;  %v91_v7 = vrot.slane %v1015_v4, %v90_v1  ;;  %v99_v8 = vrot.slane %v1015_v4, %v98_v2  ;;  %v95_v9 = vrot.slane %v1015_v4, %v94_v5  ;;  %v357_v22 = vld [vmem:[%s1153_s3 + $0x48] sm:$0xff]  ;;  %v372_v23 = vld [vmem:[%s1153_s3 + $0xc0] sm:$0xff]  ;;  %v371_v25 = vld [vmem:[%s1153_s3 + $0xb8] sm:$0xff] }
  0x17   :  { %284 = vmatprep.subr.mxu0 %v73_v38  ;;  %671 = vmatpush3.msra.mxu1 %v362_v53  ;;  %v103_v10 = vrot.slane %v1015_v4, %v102_v6  ;;  %v356_v24 = vld [vmem:[%s1153_s3 + $0x40] sm:$0xff]  ;;  %v355_v26 = vld [vmem:[%s1153_s3 + $0x38] sm:$0xff]  ;;  %v370_v27 = vld [vmem:[%s1153_s3 + $0xb0] sm:$0xff] }
  0x18   :  { %285 = vmatpush1.msra.mxu0 %v72_v39  ;;  %672 = vmatprep.subr.mxu1 %v377_v54  ;;  %v354_v28 = vld [vmem:[%s1153_s3 + $0x30] sm:$0xff]  ;;  %v369_v29 = vld [vmem:[%s1153_s3 + $0xa8] sm:$0xff]  ;;  %v368_v31 = vld [vmem:[%s1153_s3 + $0xa0] sm:$0xff] }
  0x19   :  { %286 = vmatprep.subr.mxu0 %v67_v40  ;;  %673 = vmatpush3.msra.mxu1 %v361_v55  ;;  %v353_v30 = vld [vmem:[%s1153_s3 + $0x28] sm:$0xff]  ;;  %v352_v32 = vld [vmem:[%s1153_s3 + $0x20] sm:$0xff]  ;;  %v351_v34 = vld [vmem:[%s1153_s3 + $0x18] sm:$0xff] }
  0x1a   :  { %287 = vmatpush1.msra.mxu0 %v66_v41  ;;  %674 = vmatprep.subr.mxu1 %v376_v56  ;;  %v366_v35 = vld [vmem:[%s1153_s3 + $0x90] sm:$0xff]  ;;  %v365_v37 = vld [vmem:[%s1153_s3 + $0x88] sm:$0xff]  ;;  %v364_v39 = vld [vmem:[%s1153_s3 + $0x80] sm:$0xff] }
  0x1b   :  { %288 = vmatprep.subr.mxu0 %v61_v42  ;;  %675 = vmatpush3.msra.mxu1 %v360_v57  ;;  %v350_v36 = vld [vmem:[%s1153_s3 + $0x10] sm:$0xff]  ;;  %v349_v38 = vld [vmem:[%s1153_s3 + $0x8] sm:$0xff]  ;;  %v348_v40 = vld [vmem:[%s1153_s3] sm:$0xff] }
  0x1c   :  { %289 = vmatpush1.msra.mxu0 %v60_v43  ;;  %676 = vmatprep.subr.mxu1 %v375_v58  ;;  %v465_v58 = vld [vmem:[%s1155_s4 + $0x38] sm:$0xff]  ;;  %v460_v63 = vld [vmem:[%s1155_s4 + $0x10] sm:$0xff]  ;;  %v458_v1 = vld [vmem:[%s1155_s4] sm:$0xff] }
  0x1d   :  { %290 = vmatprep.subr.mxu0 %v55_v44  ;;  %677 = vmatpush3.msra.mxu1 %v359_v59  ;;  %v464_v59 = vld [vmem:[%s1155_s4 + $0x30] sm:$0xff] }
  0x1e   :  { %291 = vmatpush1.msra.mxu0 %v54_v45  ;;  %678 = vmatprep.subr.mxu1 %v374_v60  ;;  %v463_v60 = vld [vmem:[%s1155_s4 + $0x28] sm:$0xff] }
  0x1f   :  { %292 = vmatprep.subr.mxu0 %v49_v46  ;;  %679 = vmatpush3.msra.mxu1 %v358_v61  ;;  %v110_v46 = vsub.s32 5, %v1008_v0  ;;  %v462_v61 = vld [vmem:[%s1155_s4 + $0x20] sm:$0xff] }
  0x20   :  { %293 = vmatpush1.msra.mxu0 %v48_v47  ;;  %680 = vmatprep.subr.mxu1 %v373_v62  ;;  %v461_v62 = vld [vmem:[%s1155_s4 + $0x18] sm:$0xff] }
  0x21   :  { %294 = vmatprep.subr.mxu0 %v43_v48  ;;  %681 = vmatpush3.msra.mxu1 %v357_v22  ;;  %v106_v48 = vsub.s32 4, %v1008_v0  ;;  %v459_v0 = vld [vmem:[%s1155_s4 + $0x8] sm:$0xff] }
  0x22   :  { %295 = vmatpush1.msra.mxu0 %v42_v49  ;;  %682 = vmatprep.subr.mxu1 %v372_v23  ;;  %v111_v49 = vrot.slane %v1015_v4, %v110_v46 }
  0x23   :  { %661 = vmatmul.mubr.msk.f32.vlgmr.msra.gmra.mxu0 %vm118_vm0, %v37_v33  ;;  %720 = vmatprep.subr.mxu0 %v758_v3  ;;  %v367_v33 = vld [vmem:[%s1153_s3 + $0x98] sm:$0xff]  ;;  %v107_v51 = vrot.slane %v1015_v4, %v106_v48 }
  0x24   :  { %683 = vmatpush3.msra.mxu1 %v356_v24  ;;  %721 = vmatpush3.msra.mxu0 %v465_v58 }
  0x25   :  { %684 = vmatprep.subr.mxu1 %v371_v25  ;;  %722 = vmatprep.subr.mxu0 %v758_v3  ;;  %v666_v25 = vld [vmem:[%s1160_s8] ss:$0 sm:$0xff] }
  0x26   :  { %685 = vmatpush3.msra.mxu1 %v355_v26  ;;  %723 = vmatpush3.msra.mxu0 %v464_v59 }
  0x27   :  { %686 = vmatprep.subr.mxu1 %v370_v27  ;;  %724 = vmatprep.subr.mxu0 %v758_v3 }
  0x28   :  { %687 = vmatpush3.msra.mxu1 %v354_v28  ;;  %725 = vmatpush3.msra.mxu0 %v463_v60 }
  0x29   :  { %688 = vmatprep.subr.mxu1 %v369_v29  ;;  %726 = vmatprep.subr.mxu0 %v758_v3 }
  0x2a   :  { %689 = vmatpush3.msra.mxu1 %v353_v30  ;;  %727 = vmatpush3.msra.mxu0 %v462_v61 }
  0x2b   :  { %690 = vmatprep.subr.mxu1 %v368_v31  ;;  %728 = vmatprep.subr.mxu0 %v758_v3 }
  0x2c   :  { %691 = vmatpush3.msra.mxu1 %v352_v32  ;;  %729 = vmatpush3.msra.mxu0 %v461_v62 }
  0x2d   :  { %692 = vmatprep.subr.mxu1 %v367_v33  ;;  %730 = vmatprep.subr.mxu0 %v758_v3 }
  0x2e   :  { %693 = vmatpush3.msra.mxu1 %v351_v34  ;;  %731 = vmatpush3.msra.mxu0 %v460_v63 }
  0x2f   :  { %694 = vmatprep.subr.mxu1 %v366_v35  ;;  %732 = vmatprep.subr.mxu0 %v758_v3 }
  0x30   :  { %695 = vmatpush3.msra.mxu1 %v350_v36  ;;  %733 = vmatpush3.msra.mxu0 %v459_v0 }
  0x31   :  { %696 = vmatprep.subr.mxu1 %v365_v37  ;;  %734 = vmatprep.subr.mxu0 %v758_v3 }
  0x32   :  { %697 = vmatpush3.msra.mxu1 %v349_v38  ;;  %735 = vmatpush3.msra.mxu0 %v458_v1 }
  0x33   :  { %698 = vmatprep.subr.mxu1 %v364_v39  ;;  %736 = vmatprep.mubr.msk.f32.mxu0 %vm759_vm1, %v758_v3 }
  0x34   :  { %699 = vmatpush3.msra.mxu1 %v348_v40  ;;  %739 = vmatprep.subr.mxu0 %v758_v3 }
  0xd2   :  { %v188_v11 = vpop.f32.mrf.mxu0  ;;  %v259_v12 = vpop.f32.mrf.mxu1 }
  0xd3   :  { %v189_v13 = vadd.f32 %v188_v11, %v91_v7  ;;  %v260_v14 = vadd.f32 %v259_v12, %v99_v8  ;;  %v550_v12 = vld [vmem:[%s1156_s6 + $0x18] sm:$0xff] }
  0xd4   :  { %v190_v15 = vpop.f32.mrf.mxu0  ;;  %v261_v16 = vpop.f32.mrf.mxu1 }
  0xd5   :  { %v191_v17 = vadd.f32 %v190_v15, %v95_v9  ;;  %v262_v18 = vadd.f32 %v261_v16, %v103_v10  ;;  %v335_v19 = vmul.f32 %v260_v14, %v189_v13  ;;  %v549_v13 = vld [vmem:[%s1156_s6 + $0x10] sm:$0xff]  ;;  %v548_v14 = vld [vmem:[%s1156_s6 + $0x8] sm:$0xff]  ;;  %v547_v15 = vld [vmem:[%s1156_s6] sm:$0xff] }
  0xd6   :  { %v662_v16 = vld [vmem:[%s1157_s5] ss:$0 sm:$0xff] }
  0xd7   :  { %v336_v20 = vmul.f32 %v262_v18, %v191_v17 }
  0xd9   :  { %v337_v21 = vmax.f32 %v335_v19, %v336_v20 }
  0xdb   :  { %338 = vmax.xlane.f32.xlu0 %v337_v21  ;;  %v15_v21 = vstv %s1158_s9 }
  0xdc   :  { %16 = vst [vmem:[#allocation2] sm:$0x1] %v15_v21 }
  0xe3   :  { %v330_v47 = vpop.f32.mrf.mxu0  ;;  %v667_v29 = vld [vmem:[#allocation2] ss:$0 sm:$0xff] }
  0xe4   :  { %v331_v55 = vadd.f32 %v330_v47, %v107_v51 }
  0xe5   :  { %v332_v50 = vpop.f32.mrf.mxu0 }
  0xe6   :  { %v333_v52 = vadd.f32 %v332_v50, %v111_v49 }
 0x164   :  { %v339_v41 = vpop.xlane.xlu0 %338 }
 0x165   :  { %v340_v42 = vsub.f32 %v335_v19, %v339_v41  ;;  %v341_v43 = vsub.f32 %v336_v20, %v339_v41 }
 0x167   :  { %v342_v44 = vmul.f32 1.442695, %v340_v42  ;;  %v344_v45 = vmul.f32 1.442695, %v341_v43 }
 0x169   :  { %752 = vpow2.f32 %v342_v44 }
 0x16a   :  { %754 = vpow2.f32 %v344_v45 }
 0x176   :  { %v753_v53 = vpop.eup %752 }
 0x177   :  { %v755_v54 = vpop.eup %754  ;;  %v346_v57 = vmul.f32 %v753_v53, %v331_v55 }
 0x178   :  { %v347_v56 = vmul.f32 %v755_v54, %v333_v52  ;;  %444 = vmatprep.mubr.f32.mxu1 %v755_v54 }
 0x179   :  { %445 = vmatmul.mubr.f32.vlgmr.msra.gmra.mxu1 %v753_v53 }
 0x17a   :  { %449 = vmatprep.mubr.f32.mxu1 %v347_v56 }
 0x17d   :  { %450 = vmatmul.mubr.f32.gmra.mxu1 %v346_v57 }
 0x239   :  { %v700_v2 = vpop.f32.mrf.mxu1 }
 0x23b   :  { %v701_v4 = vpop.f32.mrf.mxu1 }
 0x23c   :  { %v702_v5 = vadd.f32 %v701_v4, %v700_v2 }
 0x23d   :  { %v703_v7 = vpop.f32.mrf.mxu1 }
 0x23e   :  { %v455_v6 = vmax.f32 %v702_v5, 1e-30 }
 0x23f   :  { %v704_v8 = vpop.f32.mrf.mxu1 }
 0x240   :  { %756 = vrcp.f32 %v455_v6  ;;  %v705_v9 = vadd.f32 %v704_v8, %v703_v7 }
 0x24d   :  { %v757_v10 = vpop.eup %756 }
 0x24e   :  { %v457_v11 = vmul.f32 %v757_v10, %v705_v9 }
 0x250   :  { %737 = vmatmul.mubr.msk.f32.vlgmr.msra.gmra.mxu0 %vm118_vm0, %v457_v11 }
 0x251   :  { %740 = vmatpush3.msra.mxu0 %v550_v12  ;;  %747 = vmatprep.mubr.msk.f32.mxu0 %vm759_vm1, %v758_v3 }
 0x252   :  { %741 = vmatprep.subr.mxu0 %v758_v3 }
 0x253   :  { %742 = vmatpush3.msra.mxu0 %v549_v13 }
 0x254   :  { %743 = vmatprep.subr.mxu0 %v758_v3 }
 0x255   :  { %744 = vmatpush3.msra.mxu0 %v548_v14 }
 0x256   :  { %745 = vmatprep.subr.mxu0 %v758_v3  ;;  %v664_v3 = vld [vmem:[%s1159_s7] ss:$0 sm:$0xff] }
 0x257   :  { %746 = vmatpush3.msra.mxu0 %v547_v15 }
 0x310   :  { %v542_v17 = vpop.f32.mrf.mxu0 }
 0x311   :  { %v543_v18 = vadd.f32 %v662_v16, %v542_v17 }
 0x312   :  { %v738_v19 = vpop.f32.mrf.mxu0 }
 0x313   :  { %v546_v20 = vmax.f32 %v543_v18, 0.0 }
 0x315   :  { %748 = vmatmul.mubr.msk.f32.vlgmr.msra.gmra.mxu0 %vm558_vm2, %v546_v20 }
 0x3d5   :  { %v628_v22 = vpop.f32.mrf.mxu0 }
 0x3d6   :  { %v629_v23 = vadd.f32 %v664_v3, %v628_v22 }
 0x3d7   :  { %v749_v24 = vpop.f32.mrf.mxu0 }
 0x3d8   :  { %v632_v26 = vmax.f32 %v629_v23, 0.0 }
 0x3da   :  { %v640_v27 = vmul.f32 %v666_v25, %v632_v26 }
 0x3dc   :  { %v642_v28 = vsel %vm641_vm3, %v640_v27, 0.0 }
 0x3dd   :  { %643 = vadd.xlane.f32.xlu0 %v642_v28 }
 0x466   :  { %v644_v30 = vpop.xlane.xlu0 %643 }
 0x467   :  { %v652_v31 = vadd.f32 %v667_v29, %v644_v30 }
 0x469   :  { %654 = vst.msk [vmem:[%s1161_s10] sm:$0xff] %vm653_vm4, %v652_v31 }

</bundles_post_ra>
